<compile_context>
chip_gen: v7x
topology: tpu7x:2x2x1
jax: 0.10.0
libtpu: 0.0.40
codegen_flags: <defaults>
</compile_context>

<pallas_src>
import functools

import jax
import jax.numpy as jnp
from jax.experimental import pallas as pl
from jax.experimental.pallas import tpu as pltpu


def _kl_loss_kernel(pred_ref, tgt_ref, mask_ref, loss_ref, cnt_ref,
                    loss_acc, cnt_acc, *, n_rows, block_n, blocks_per_slot):
    p = pl.program_id(0)       # parallel slot (maps to a TensorCore on v7x)
    i = pl.program_id(1)       # reduction over row blocks

    @pl.when(i == 0)
    def _():
        loss_acc[...] = jnp.zeros_like(loss_acc)
        cnt_acc[...] = jnp.zeros_like(cnt_acc)

    pred = pred_ref[...].astype(jnp.float32)        # (bn, C)
    tgt = tgt_ref[...].astype(jnp.float32)          # (bn, C)
    mask = mask_ref[...].astype(jnp.float32)        # (bn, 1)

    # Row validity for this (possibly partial / clamped-duplicate) block,
    # derived from the *unclamped* global block index so clamped duplicate
    # blocks and ragged-tail garbage contribute nothing.
    row0 = (p * blocks_per_slot + i) * block_n
    rid = row0 + jax.lax.broadcasted_iota(jnp.int32, (block_n, 1), 0)
    valid = rid < n_rows                            # (bn, 1) bool

    # Numerically-stable logsumexp over the class (lane) axis.
    mx = jnp.max(pred, axis=-1, keepdims=True)
    lse = mx + jnp.log(jnp.sum(jnp.exp(pred - mx), axis=-1, keepdims=True))

    # sum_y tgt[i,y]*(lse_i - pred[i,y]) = lse_i * sum_y tgt - sum_y tgt*pred
    tgt_sum = jnp.sum(tgt, axis=-1, keepdims=True)
    wdot = jnp.sum(tgt * pred, axis=-1, keepdims=True)
    per_row = lse * tgt_sum - wdot                  # (bn, 1)

    # Pure element-wise (VPU) accumulation; select() keeps NaN/garbage in
    # invalid rows from leaking into the sums.
    loss_acc[...] += jnp.where(valid, per_row * mask, 0.0)
    cnt_acc[...] += jnp.where(valid, mask, 0.0)

    # Epilogue: single cross-vreg reduction + store of this slot's partials.
    @pl.when(i == pl.num_programs(1) - 1)
    def _():
        loss_ref[...] = jnp.sum(loss_acc[...]).reshape(1, 1, 1)
        cnt_ref[...] = jnp.sum(cnt_acc[...]).reshape(1, 1, 1)


@functools.partial(jax.jit, static_argnames=("bn", "bps", "blocks_total"))
def _kl_loss_partials(pred, tgt, mask, *, bn, bps, blocks_total):
    n, c = pred.shape
    last_block = blocks_total - 1

    def in_map(p, i):
        # Clamp so duplicate blocks (when 2*bps > blocks_total) stay in bounds;
        # the kernel's row-validity mask zeroes their contribution.
        return (jnp.minimum(p * bps + i, last_block), 0)

    kernel = functools.partial(_kl_loss_kernel, n_rows=n, block_n=bn,
                               blocks_per_slot=bps)

    loss_parts, cnt_parts = pl.pallas_call(
        kernel,
        out_shape=(jax.ShapeDtypeStruct((2, 1, 1), jnp.float32),
                   jax.ShapeDtypeStruct((2, 1, 1), jnp.float32)),
        grid_spec=pltpu.PrefetchScalarGridSpec(
            num_scalar_prefetch=0,
            grid=(2, bps),
            in_specs=[
                pl.BlockSpec((bn, c), in_map),
                pl.BlockSpec((bn, c), in_map),
                pl.BlockSpec((bn, 1), in_map),
            ],
            out_specs=[
                pl.BlockSpec((1, 1, 1), lambda p, i: (p, 0, 0)),
                pl.BlockSpec((1, 1, 1), lambda p, i: (p, 0, 0)),
            ],
            scratch_shapes=[
                pltpu.VMEM((bn, 1), jnp.float32),
                pltpu.VMEM((bn, 1), jnp.float32),
            ],
        ),
        compiler_params=pltpu.CompilerParams(
            dimension_semantics=("parallel", "arbitrary"),
        ),
    )(pred, tgt, mask)
    return loss_parts, cnt_parts


def kl_loss(predicted, target, label=None, num_classes=10, block_n=512):
    """Pallas equivalent of KLLoss(num_classes).forward(predicted, target, label)."""
    n, c = predicted.shape
    assert c == num_classes

    if label is None:
        mask = jnp.ones((n, 1), jnp.float32)
    else:
        mask = (jnp.asarray(label) != -100).astype(jnp.float32).reshape(n, 1)

    # Row-tile size: multiple of 8 sublanes, no larger than the (rounded) row
    # count so we never create needlessly oversized blocks for tiny inputs.
    block_n = max(8, (block_n // 8) * 8)
    bn = min(block_n, max(8, (n // 8) * 8))
    blocks_total = pl.cdiv(n, bn)
    bps = pl.cdiv(blocks_total, 2)   # row blocks per parallel slot (2 slots)

    loss_parts, cnt_parts = _kl_loss_partials(
        predicted, target, mask, bn=bn, bps=bps, blocks_total=blocks_total)

    # Matches PyTorch: mean over zero selected rows yields NaN (no guard).
    return jnp.sum(loss_parts) / jnp.sum(cnt_parts)


def _reference(predicted, target, label=None):
    """Pure-JAX reference mirroring the PyTorch loop."""
    lse = jax.scipy.special.logsumexp(predicted, axis=-1, keepdims=True)
    per_class_ce = lse - predicted                     # (N, C)
    cum = jnp.sum(target * per_class_ce, axis=-1)      # (N,)
    if label is None:
        return jnp.mean(cum)
    m = (label != -100).astype(jnp.float32)
    return jnp.sum(cum * m) / jnp.sum(m)


if __name__ == "__main__":
    key = jax.random.PRNGKey(0)
    k1, k2, k3, k4, k5 = jax.random.split(key, 5)

    num_classes = 10

    # Case 1: small dense case, no label filtering.
    n1 = 8
    pred1 = jax.random.normal(k1, (n1, num_classes), jnp.float32)
    tgt1 = jax.nn.softmax(
        jax.random.normal(k2, (n1, num_classes), jnp.float32), axis=-1)
    out1 = jax.block_until_ready(kl_loss(pred1, tgt1, num_classes=num_classes))
    ref1 = _reference(pred1, tgt1)
    assert jnp.allclose(out1, ref1, rtol=1e-5, atol=1e-5), (out1, ref1)

    # Case 2: ragged row count (not a multiple of 8) + label filtering.
    n2 = 13
    pred2 = jax.random.normal(k3, (n2, num_classes), jnp.float32)
    tgt2 = jax.nn.softmax(
        jax.random.normal(k4, (n2, num_classes), jnp.float32), axis=-1)
    label2 = jnp.where(jax.random.uniform(k5, (n2,)) < 0.3, -100, 1)
    label2 = label2.at[0].set(1)   # keep at least one row
    out2 = jax.block_until_ready(
        kl_loss(pred2, tgt2, label=label2, num_classes=num_classes))
    ref2 = _reference(pred2, tgt2, label2)
    assert jnp.allclose(out2, ref2, rtol=1e-5, atol=1e-5), (out2, ref2)

    print("KERNEL_OK")
</pallas_src>

<mosaic_0001>
module attributes {stable_mosaic.version = 11 : i64} {
  func.func @_kl_loss_kernel(%arg0: i32, %arg1: i32, %arg2: memref<8x10xf32, #tpu.memory_space<vmem>>, %arg3: memref<8x10xf32, #tpu.memory_space<vmem>>, %arg4: memref<8x1xf32, #tpu.memory_space<vmem>>, %arg5: memref<1x1x1xf32, #tpu.memory_space<vmem>>, %arg6: memref<1x1x1xf32, #tpu.memory_space<vmem>>, %arg7: memref<8x1xf32, #tpu.memory_space<vmem>>, %arg8: memref<8x1xf32, #tpu.memory_space<vmem>>) attributes {dimension_semantics = [#tpu.dimension_semantics<parallel>, #tpu.dimension_semantics<arbitrary>], iteration_bounds = array<i64: 2, 1>, scalar_prefetch = 0 : i64, scratch_operands = 2 : i64, tpu.core_type = #tpu.core_type<tc>, window_params = [{transform_indices = @transform_0, window_bounds = array<i64: 8, 10>}, {transform_indices = @transform_1, window_bounds = array<i64: 8, 10>}, {transform_indices = @transform_2, window_bounds = array<i64: 8, 1>}, {transform_indices = @transform_3, window_bounds = array<i64: 1, 1, 1>}, {transform_indices = @transform_4, window_bounds = array<i64: 1, 1, 1>}]} {
    %c0_i32 = arith.constant 0 : i32
    %0 = arith.cmpi eq, %arg1, %c0_i32 : i32
    %1 = arith.extui %0 : i1 to i32
    %c0_i32_0 = arith.constant 0 : i32
    %2 = arith.cmpi ne, %1, %c0_i32_0 : i32
    scf.if %2 {
      %cst_22 = arith.constant 0.000000e+00 : f32
      %44 = vector.broadcast %cst_22 : f32 to vector<8x1xf32>
      %c0_23 = arith.constant 0 : index
      %c0_24 = arith.constant 0 : index
      %45 = vector.load %arg7[%c0_23, %c0_24] : memref<8x1xf32, #tpu.memory_space<vmem>>, vector<8x1xf32>
      tpu.vector_store %arg7[%c0_23, %c0_24], %44 {strides = array<i32>} : memref<8x1xf32, #tpu.memory_space<vmem>>, vector<8x1xf32>,
      %cst_25 = arith.constant 0.000000e+00 : f32
      %46 = vector.broadcast %cst_25 : f32 to vector<8x1xf32>
      %c0_26 = arith.constant 0 : index
      %c0_27 = arith.constant 0 : index
      %47 = vector.load %arg8[%c0_26, %c0_27] : memref<8x1xf32, #tpu.memory_space<vmem>>, vector<8x1xf32>
      tpu.vector_store %arg8[%c0_26, %c0_27], %46 {strides = array<i32>} : memref<8x1xf32, #tpu.memory_space<vmem>>, vector<8x1xf32>,
    } else {
    }
    %c0 = arith.constant 0 : index
    %c0_1 = arith.constant 0 : index
    %3 = vector.load %arg2[%c0, %c0_1] : memref<8x10xf32, #tpu.memory_space<vmem>>, vector<8x10xf32>
    %c0_2 = arith.constant 0 : index
    %c0_3 = arith.constant 0 : index
    %4 = vector.load %arg3[%c0_2, %c0_3] : memref<8x10xf32, #tpu.memory_space<vmem>>, vector<8x10xf32>
    %c0_4 = arith.constant 0 : index
    %c0_5 = arith.constant 0 : index
    %5 = vector.load %arg4[%c0_4, %c0_5] : memref<8x1xf32, #tpu.memory_space<vmem>>, vector<8x1xf32>
    %c1_i32 = arith.constant 1 : i32
    %6 = arith.muli %arg0, %c1_i32 : i32
    %7 = arith.addi %6, %arg1 : i32
    %c8_i32 = arith.constant 8 : i32
    %8 = arith.muli %7, %c8_i32 : i32
    %9 = tpu.iota {dimensions = array<i32: 0>} : vector<8x1xi32>
    %10 = vector.broadcast %8 : i32 to vector<8x1xi32>
    %11 = arith.addi %10, %9 : vector<8x1xi32>
    %c8_i32_6 = arith.constant 8 : i32
    %12 = vector.broadcast %c8_i32_6 : i32 to vector<8x1xi32>
    %13 = arith.cmpi slt, %11, %12 : vector<8x1xi32>
    %cst = arith.constant dense<0xFF800000> : vector<8xf32>
    %14 = vector.multi_reduction <maximumf>, %3, %cst [1] : vector<8x10xf32> to vector<8xf32>
    %15 = vector.shape_cast %14 : vector<8xf32> to vector<8x1xf32>
    %16 = vector.broadcast %15 : vector<8x1xf32> to vector<8x10xf32>
    %17 = arith.subf %3, %16 : vector<8x10xf32>
    %18 = math.exp %17 : vector<8x10xf32>
    %cst_7 = arith.constant dense<0.000000e+00> : vector<8xf32>
    %19 = vector.multi_reduction <add>, %18, %cst_7 [1] : vector<8x10xf32> to vector<8xf32>
    %20 = vector.shape_cast %19 : vector<8xf32> to vector<8x1xf32>
    %21 = math.log %20 : vector<8x1xf32>
    %22 = arith.addf %15, %21 : vector<8x1xf32>
    %cst_8 = arith.constant dense<0.000000e+00> : vector<8xf32>
    %23 = vector.multi_reduction <add>, %4, %cst_8 [1] : vector<8x10xf32> to vector<8xf32>
    %24 = vector.shape_cast %23 : vector<8xf32> to vector<8x1xf32>
    %25 = arith.mulf %4, %3 : vector<8x10xf32>
    %cst_9 = arith.constant dense<0.000000e+00> : vector<8xf32>
    %26 = vector.multi_reduction <add>, %25, %cst_9 [1] : vector<8x10xf32> to vector<8xf32>
    %27 = vector.shape_cast %26 : vector<8xf32> to vector<8x1xf32>
    %28 = arith.mulf %22, %24 : vector<8x1xf32>
    %29 = arith.subf %28, %27 : vector<8x1xf32>
    %c0_10 = arith.constant 0 : index
    %c0_11 = arith.constant 0 : index
    %30 = vector.load %arg7[%c0_10, %c0_11] : memref<8x1xf32, #tpu.memory_space<vmem>>, vector<8x1xf32>
    %31 = arith.mulf %29, %5 : vector<8x1xf32>
    %cst_12 = arith.constant 0.000000e+00 : f32
    %32 = vector.broadcast %cst_12 : f32 to vector<8x1xf32>
    %33 = arith.select %13, %31, %32 : vector<8x1xi1>, vector<8x1xf32>
    %34 = arith.addf %30, %33 : vector<8x1xf32>
    %c0_13 = arith.constant 0 : index
    %c0_14 = arith.constant 0 : index
    %35 = vector.load %arg7[%c0_13, %c0_14] : memref<8x1xf32, #tpu.memory_space<vmem>>, vector<8x1xf32>
    tpu.vector_store %arg7[%c0_13, %c0_14], %34 {strides = array<i32>} : memref<8x1xf32, #tpu.memory_space<vmem>>, vector<8x1xf32>,
    %c0_15 = arith.constant 0 : index
    %c0_16 = arith.constant 0 : index
    %36 = vector.load %arg8[%c0_15, %c0_16] : memref<8x1xf32, #tpu.memory_space<vmem>>, vector<8x1xf32>
    %cst_17 = arith.constant 0.000000e+00 : f32
    %37 = vector.broadcast %cst_17 : f32 to vector<8x1xf32>
    %38 = arith.select %13, %5, %37 : vector<8x1xi1>, vector<8x1xf32>
    %39 = arith.addf %36, %38 : vector<8x1xf32>
    %c0_18 = arith.constant 0 : index
    %c0_19 = arith.constant 0 : index
    %40 = vector.load %arg8[%c0_18, %c0_19] : memref<8x1xf32, #tpu.memory_space<vmem>>, vector<8x1xf32>
    tpu.vector_store %arg8[%c0_18, %c0_19], %39 {strides = array<i32>} : memref<8x1xf32, #tpu.memory_space<vmem>>, vector<8x1xf32>,
    %c0_i32_20 = arith.constant 0 : i32
    %41 = arith.cmpi eq, %arg1, %c0_i32_20 : i32
    %42 = arith.extui %41 : i1 to i32
    %c0_i32_21 = arith.constant 0 : i32
    %43 = arith.cmpi ne, %42, %c0_i32_21 : i32
    scf.if %43 {
      %c0_22 = arith.constant 0 : index
      %c0_23 = arith.constant 0 : index
      %44 = vector.load %arg7[%c0_22, %c0_23] : memref<8x1xf32, #tpu.memory_space<vmem>>, vector<8x1xf32>
      %45 = vector.shape_cast %44 : vector<8x1xf32> to vector<1x8x1xf32>
      %cst_24 = arith.constant dense<0.000000e+00> : vector<1xf32>
      %46 = vector.multi_reduction <add>, %45, %cst_24 [1, 2] : vector<1x8x1xf32> to vector<1xf32>
      %47 = vector.shape_cast %46 : vector<1xf32> to vector<1x1x1xf32>
      %48 = vector.extract %47[0, 0, 0] : f32 from vector<1x1x1xf32>
      %49 = vector.broadcast %48 : f32 to vector<1x1x1xf32>
      %c0_25 = arith.constant 0 : index
      %c0_26 = arith.constant 0 : index
      %c0_27 = arith.constant 0 : index
      %50 = vector.load %arg5[%c0_25, %c0_26, %c0_27] : memref<1x1x1xf32, #tpu.memory_space<vmem>>, vector<1x1x1xf32>
      tpu.vector_store %arg5[%c0_25, %c0_26, %c0_27], %49 {strides = array<i32>} : memref<1x1x1xf32, #tpu.memory_space<vmem>>, vector<1x1x1xf32>,
      %c0_28 = arith.constant 0 : index
      %c0_29 = arith.constant 0 : index
      %51 = vector.load %arg8[%c0_28, %c0_29] : memref<8x1xf32, #tpu.memory_space<vmem>>, vector<8x1xf32>
      %52 = vector.shape_cast %51 : vector<8x1xf32> to vector<1x8x1xf32>
      %cst_30 = arith.constant dense<0.000000e+00> : vector<1xf32>
      %53 = vector.multi_reduction <add>, %52, %cst_30 [1, 2] : vector<1x8x1xf32> to vector<1xf32>
      %54 = vector.shape_cast %53 : vector<1xf32> to vector<1x1x1xf32>
      %55 = vector.extract %54[0, 0, 0] : f32 from vector<1x1x1xf32>
      %56 = vector.broadcast %55 : f32 to vector<1x1x1xf32>
      %c0_31 = arith.constant 0 : index
      %c0_32 = arith.constant 0 : index
      %c0_33 = arith.constant 0 : index
      %57 = vector.load %arg6[%c0_31, %c0_32, %c0_33] : memref<1x1x1xf32, #tpu.memory_space<vmem>>, vector<1x1x1xf32>
      tpu.vector_store %arg6[%c0_31, %c0_32, %c0_33], %56 {strides = array<i32>} : memref<1x1x1xf32, #tpu.memory_space<vmem>>, vector<1x1x1xf32>,
    } else {
    }
    return
  }
  func.func @transform_0(%arg0: i32, %arg1: i32) -> (i32, i32) {
    %c1_i32 = arith.constant 1 : i32
    %0 = arith.muli %arg0, %c1_i32 : i32
    %1 = arith.addi %0, %arg1 : i32
    %c0_i32 = arith.constant 0 : i32
    %2 = arith.minsi %1, %c0_i32 : i32
    %c0_i32_0 = arith.constant 0 : i32
    %c0_i32_1 = arith.constant 0 : i32
    return %2, %c0_i32_0 : i32, i32
  }
  func.func @transform_1(%arg0: i32, %arg1: i32) -> (i32, i32) {
    %c1_i32 = arith.constant 1 : i32
    %0 = arith.muli %arg0, %c1_i32 : i32
    %1 = arith.addi %0, %arg1 : i32
    %c0_i32 = arith.constant 0 : i32
    %2 = arith.minsi %1, %c0_i32 : i32
    %c0_i32_0 = arith.constant 0 : i32
    %c0_i32_1 = arith.constant 0 : i32
    return %2, %c0_i32_0 : i32, i32
  }
  func.func @transform_2(%arg0: i32, %arg1: i32) -> (i32, i32) {
    %c1_i32 = arith.constant 1 : i32
    %0 = arith.muli %arg0, %c1_i32 : i32
    %1 = arith.addi %0, %arg1 : i32
    %c0_i32 = arith.constant 0 : i32
    %2 = arith.minsi %1, %c0_i32 : i32
    %c0_i32_0 = arith.constant 0 : i32
    %c0_i32_1 = arith.constant 0 : i32
    return %2, %c0_i32_0 : i32, i32
  }
  func.func @transform_3(%arg0: i32, %arg1: i32) -> (i32, i32, i32) {
    %c0_i32 = arith.constant 0 : i32
    %c0_i32_0 = arith.constant 0 : i32
    %c0_i32_1 = arith.constant 0 : i32
    return %arg0, %c0_i32, %c0_i32_0 : i32, i32, i32
  }
  func.func @transform_4(%arg0: i32, %arg1: i32) -> (i32, i32, i32) {
    %c0_i32 = arith.constant 0 : i32
    %c0_i32_0 = arith.constant 0 : i32
    %c0_i32_1 = arith.constant 0 : i32
    return %arg0, %c0_i32, %c0_i32_0 : i32, i32, i32
  }
}

</mosaic_0001>

<bundles_post_ra>
// kernel: _kl_loss_partials.1
= control target key start
LH: loop header
LB: loop body
LE: loop exit
PB: predicated region body
PF: predicated region fallthrough
CT: control target
= control target key end

     0   :  { %10 = vsyncpa [#allocation5], 0  ;;  %s816_s0 = inlined_call_operand.vmem [shape: f32[8,10], index: 0, kind: input, shape index: {}]   ;;  %s817_s1 = inlined_call_operand.hbm [shape: f32[8,10], index: 1, kind: input, shape index: {}]   ;;  %s818_s2 = inlined_call_operand.vmem [shape: f32[8,1], index: 2, kind: input, shape index: {}]   ;;  %s819_s3 = inlined_call_operand.vmem [shape: f32[2,1,1], index: 3, kind: output, shape index: {0}]   ;;  %s820_s4 = inlined_call_operand.vmem [shape: f32[2,1,1], index: 4, kind: output, shape index: {1}]  }
   0x1   :  { %12 = vsyncpa [#allocation5 + $0x1], 0  ;;  %s704_s15 = smov 0   ;;  %s706_s16 = smov 0  }
   0x2   :  { %s708_s17 = smov 0   ;;  %s710_s18 = smov 0  }
   0x3   :  { %s712_s19 = smov 0  }
   0x4 LB: > { %s515_s20 = sadd.s32 4294967295, %s675_s19   ;;  %s30_s21 = sadd.s32 1, %s671_s18  ;;  %s675_s19 = sphi %s712_s19, %s18_s19   ;;  %s671_s18 = sphi %s710_s18, %s831_s18   ;;  %s667_s17 = sphi %s708_s17, %s830_s17   ;;  %s663_s16 = sphi %s706_s16, %s806_s16   ;;  %s659_s15 = sphi %s704_s15, %s829_s15  }
   0x5   : > { %p32_p0 = scmp.ge.s32.totalorder %s30_s21, 2  ;;  %p656_p1 = scmp.ne.s32.totalorder %s663_s16, 0 }
   0x6   : > { %p83_p2 = scmp.eq.s32.totalorder %s675_s19, 0  ;;  %p88_p3 = scmp.ne.s32.totalorder %s663_s16, %s659_s15 }
   0x7   : > { %s833_s21 = smov (%p32_p0, %s30_s21), 0  ;;  %p89_p4 = scmp.eq.s32.totalorder %s515_s20, 0 }
   0x8   : > { %p84_p5 = por %p656_p1, %p83_p2  ;;  %p544_p7 = scmp.lt.s32.totalorder %s675_s19, 2 }
   0x9   : > { %p734_p6 = por %p89_p4, %p88_p3  ;;  %s677_s23 = smov [#allocation4]  }
   0xa   : > { %s223_s24 = sshll.u32 %s677_s23, 4  ;;  %p739_p8 = pnand %p544_p7, %p84_p5  ;;  %s224_s24 = int_to_ptr.vmem [resolvable:$true] %s223_s24 }
   0xb   : > { %s823_s22 = scalar_select %p734_p6, 1, 0 }
   0xc   : > { %s824_s25 = scalar_select %p739_p8, 1, 0 }
   0xd   : > { %s598_s28 = scalar_lea.hbm %s817_s1, 128  ;;  %p600_p12 = pneg %p739_p8 }
   0xe   : > { %p599_p11 = scmp.ne.s32.totalorder %s817_s1, %s598_s28  ;;  %p605_p1 = scmp.lt.u32.totalorder %s598_s28, %s598_s28 }
   0xf   : > { %p607_p2 = scmp.lt.u32.totalorder %s598_s28, %s817_s1 }
  0x10   : > { %p601_p13 = pnand %p600_p12, %p599_p11 }
  0x11   : > { %p608_p3 = por %p607_p2, %p605_p1 }
  0x12   : > { %p602_p0 = pneg %p601_p13 }
  0x14   : > { %p609_p4 = pnand %p608_p3, %p602_p0 }
  0x16   : > { %612 = shalt.err (!%p609_p4)
}
  0x17   : > { %s613_s7 = scalar_lea.vmem %s224_s24, 128  ;;  %s620_s8 = scalar_lea.vmem %s224_s24, 256 }
  0x18   : > { %p614_p5 = scmp.ne.s32.totalorder %s224_s24, %s613_s7  ;;  %p621_p10 = scmp.lt.s32.totalorder %s224_s24, %s224_s24 }
  0x19   : > { %p622_p6 = scmp.lt.s32.totalorder %s620_s8, %s613_s7 }
  0x1a   : > { %p616_p7 = pnand %p614_p5, %p600_p12 }
  0x1b   : > { %p623_p8 = por %p622_p6, %p621_p10 }
  0x1c   : > { %p617_p9 = pneg %p616_p7 }
  0x1e   : > { %p624_p11 = pnand %p623_p8, %p617_p9 }
  0x20   : > { %627 = shalt.err (!%p624_p11)
}
  0x21   : > { %p825_p13 = scmp.ne.s32.totalorder %s824_s25, 0  ;;  %p826_p0 = scmp.lt.s32.totalorder %s675_s19, 3 }
  0x22   : > { %p827_p1 = scmp.ge.s32.totalorder %s675_s19, 1 }
  0x23   : > { %543 = dma.hbm_to_vmem [thread:$0]  (!%p825_p13), %s817_s1, 128, %s224_s24, [#allocation5]  }
  0x24   : > { %p242_p2 = pnand %p827_p1, %p826_p0 }
  0x25   : > { %s247_s11 = sand.u32 (!%p242_p2), 1, %s663_s16   ;;  %p828_p6 = scmp.ne.s32.totalorder (!%p242_p2), %s823_s22, 0 }
  0x26   : > { %245 = sbr.rel (%p242_p2) target bundleno = 595 (0x253), region = 32  ;;  %s522_s12 = sshll.u32 (!%p242_p2), %s247_s11, 3 }
  0x27   : > { %s248_s13 = scalar_lea.sflag (!%p242_p2), [#allocation5], %s247_s11  ;;  %s251_s14 = scalar_lea.vmem (!%p242_p2), [#allocation4], %s522_s12 }
  0x2d   : > { %653 = dma.done.wait (%p828_p6), %s248_s13, 128  }
  0x2e   : > { %655 = vsyncadd (%p828_p6), %s248_s13, 4294967168  ;;  %p292_p8 = scmp.lt.s32.totalorder %s667_s17, 0  ;;  %vm337_vm0 = vcmask 80896   ;;  %v328_v2 = vld [vmem:[%s251_s14] sm:$0xff]  ;;  %vm324_vm1 = vcmask 7168   ;;  %v332_v11 = vlaneseq  ;;  %v678_v12 = vmov 0.0  }
  0x2f   : > { %v350_v3 = vsel %vm337_vm0, %v328_v2, 0.0  ;;  %325 = vst.msk [vmem:[#allocation2] sm:$0xff] %vm324_vm1, %v678_v12  ;;  %326 = vst.msk [vmem:[#allocation3] sm:$0xff] %vm324_vm1, %v678_v12  ;;  %s531_s22 = sshll.u32 %s667_s17, 3  ;;  %p314_p9 = scmp.lt.s32.totalorder %s667_s17, 1  ;;  %vm384_vm3 = vcmask 0  }
  0x30   : > { %s293_s15 = scalar_select %p292_p8, %s667_s17, 0  ;;  %351 = vadd.xlane.f32.xlu1 %v350_v3  ;;  %v333_v13 = vshrl.u32 %v332_v11, 7  ;;  %v334_v14 = vstv %s531_s22 }
  0x31   : > { %s837_s17 = smov (!%p314_p9, %s667_s17), 1 }
  0x32   : > { %s835_s15 = smov (!%p292_p8, %s293_s15), 0  ;;  %v335_v15 = vadd.s32 %v334_v14, %v333_v13  ;;  %s316_s5 = scalar_lea.vmem %s819_s3, %s837_s17 }
  0x33   : > { %s526_s20 = sshll.u32 %s835_s15, 3  ;;  %s319_s9 = scalar_lea.vmem %s820_s4, %s837_s17 }
  0x34   : > { %s297_s25 = scalar_lea.vmem %s816_s0, %s526_s20  ;;  %s310_s28 = scalar_lea.vmem %s818_s2, %s526_s20  ;;  %vm336_vm2 = vcmp.lt.s32.totalorder %v335_v15, 8 }
  0x35   : > { %v327_v0 = vld [vmem:[%s297_s25] sm:$0xff] }
  0x36   : > { %v338_v1 = vsel %vm337_vm0, %v327_v0, -inf  ;;  %v353_v4 = vmul.f32 %v328_v2, %v327_v0  ;;  %v329_v16 = vld [vmem:[%s310_s28] sm:$0xff]  ;;  %v365_v18 = vld [vmem:[#allocation3] sm:$0xff] }
  0x37   : > { %339 = vmax.xlane.f32.xlu0 %v338_v1  ;;  %v366_v17 = vsel %vm336_vm2, %v329_v16, 0.0  ;;  %v359_v30 = vld [vmem:[#allocation2] sm:$0xff] }
  0x38   : > { %v354_v5 = vsel %vm337_vm0, %v353_v4, 0.0  ;;  %v367_v19 = vadd.f32 %v366_v17, %v365_v18 }
  0x39   : > { %355 = vadd.xlane.f32.xlu1 %v354_v5 }
  0x3a   : > { %368 = vst.msk [vmem:[#allocation3] sm:$0xff] %vm324_vm1, %v367_v19 }
  0x41   : > { %v386_v20 = vld [vmem:[#allocation3] sm:$0xff] }
  0x42   : > { %v387_v21 = vsel %vm324_vm1, %v386_v20, 0.0 }
  0x43   : > { %388 = vadd.xlane.f32.xlu1 %v387_v21 }
  0xbd   : > { %v352_v23 = vpop.xlane.xlu1 %351 }
  0xc4   : > { %v340_v6 = vpop.xlane.xlu0 %339 }
  0xc5   : > { %v341_v7 = vsub.f32 %v327_v0, %v340_v6 }
  0xc6   : > { %v356_v27 = vpop.xlane.xlu1 %355 }
  0xc7   : > { %v342_v8 = vmul.f32 1.442695, %v341_v7 }
  0xc9   : > { %594 = vpow2.f32 %v342_v8 }
  0xd0   : > { %v389_v36 = vpop.xlane.xlu1 %388 }
  0xd1   : > { %v390_v37 = vrot.slane %v389_v36, 4 }
  0xd3   : > { %v595_v9 = vpop.eup %594  ;;  %v391_v38 = vadd.f32 %v390_v37, %v389_v36 }
  0xd4   : > { %v344_v10 = vsel %vm337_vm0, %v595_v9, 0.0 }
  0xd5   : > { %345 = vadd.xlane.f32.xlu0 %v344_v10  ;;  %v392_v39 = vrot.slane %v391_v38, 2 }
  0xd7   : > { %v393_v43 = vadd.f32 %v392_v39, %v391_v38 }
  0xd9   : > { %v394_v46 = vrot.slane %v393_v43, 1 }
  0xdb   : > { %v395_v49 = vadd.f32 %v394_v46, %v393_v43 }
 0x162   : > { %v346_v22 = vpop.xlane.xlu0 %345 }
 0x163   : > { %596 = vlog2.f32 %v346_v22 }
 0x16d   : > { %v597_v24 = vpop.eup %596 }
 0x16e   : > { %v348_v25 = vmul.f32 0.6931472, %v597_v24 }
 0x170   : > { %v349_v26 = vadd.f32 %v348_v25, %v340_v6 }
 0x172   : > { %v357_v28 = vmul.f32 %v352_v23, %v349_v26 }
 0x174   : > { %v358_v29 = vsub.f32 %v357_v28, %v356_v27 }
 0x176   : > { %v360_v31 = vmul.f32 %v358_v29, %v329_v16 }
 0x178   : > { %v361_v32 = vsel %vm336_vm2, %v360_v31, 0.0 }
 0x179   : > { %v362_v33 = vadd.f32 %v361_v32, %v359_v30 }
 0x17b   : > { %364 = vst.msk [vmem:[#allocation2] sm:$0xff] %vm324_vm1, %v362_v33 }
 0x182   : > { %v372_v34 = vld [vmem:[#allocation2] sm:$0xff] }
 0x183   : > { %v373_v35 = vsel %vm324_vm1, %v372_v34, 0.0 }
 0x184   : > { %374 = vadd.xlane.f32.xlu0 %v373_v35 }
 0x211   : > { %v375_v40 = vpop.xlane.xlu0 %374 }
 0x212   : > { %v376_v41 = vrot.slane %v375_v40, 4 }
 0x214   : > { %v377_v42 = vadd.f32 %v376_v41, %v375_v40 }
 0x216   : > { %v378_v44 = vrot.slane %v377_v42, 2 }
 0x218   : > { %v379_v45 = vadd.f32 %v378_v44, %v377_v42 }
 0x21a   : > { %v380_v47 = vrot.slane %v379_v45, 1 }
 0x21c   : > { %v381_v48 = vadd.f32 %v380_v47, %v379_v45 }
 0x21e   : > { %534 = vpush %v381_v48 }
 0x21f   : > { %536 = vpush %v395_v49 }
 0x24f   : > { %s535_s6 = spop %534 }
 0x250   : > { %v383_v50 = vstv %s535_s6  ;;  %s537_s10 = spop %536 }
 0x251   : > { %385 = vst.msk [vmem:[%s316_s5] sm:$0x1] %vm384_vm3, %v383_v50  ;;  %v397_v51 = vstv %s537_s10 }
 0x252   : > { %398 = vst.msk [vmem:[%s319_s9] sm:$0x1] %vm384_vm3, %v397_v51 }
 0x253 PF: > { %s18_s19 = sadd.s32 1, %s675_s19   ;;  %s829_s15 = smov %s663_s16 }
 0x254   : > { %p15_p10 = scmp.ge.s32.totalorder %s18_s19, 4   ;;  %s806_s16 = smov 0  }
 0x255   : > { %s830_s17 = smov %s671_s18  ;;  %s831_s18 = smov %s833_s21 }
 0x256   :  { %17 = sbr.rel (!%p15_p10) target bundleno = 4 (0x4), region = 98 }
 0x25d   :  { %428 = vsyncpa [#allocation5], 1 }
 0x25e   :  { %430 = vsyncpa [#allocation5 + $0x1], 1 }

</bundles_post_ra>
